<compile_context>
chip_gen: v6e
topology: v6e:2x2x1
jax: 0.10.0
libtpu: 0.0.40
codegen_flags: <defaults>
</compile_context>

<pallas_src>
import functools

import jax
import jax.numpy as jnp
from jax.experimental import pallas as pl
from jax.experimental.pallas import tpu as pltpu

_LANE = 128
_SUBLANE_FOR_ITEMSIZE = {4: 8, 2: 16, 1: 32}


def _round_up(x, m):
    return -(-x // m) * m


def _acc_and_out_dtype(dtype):
    dtype = jnp.dtype(dtype)
    if jnp.issubdtype(dtype, jnp.floating):
        # f32 accumulation (matches torch's float acc_type for bf16/fp16 too).
        return jnp.float32, dtype
    if dtype == jnp.bool_ or jnp.issubdtype(dtype, jnp.integer):
        # TODO(synk): torch.sum promotes bool/int inputs to int64; TPU Pallas
        # has no vector int64 path, so accumulate/emit int32 instead.
        return jnp.int32, jnp.int32
    return dtype, dtype


# ---------------------------------------------------------------------------
# Kernels
# ---------------------------------------------------------------------------
def _or_sum_flat_kernel(x_ref, o_ref, *, n_children, feat, acc_dtype):
    # x_ref: (TB, N*D) lane-dense block; o_ref: (TB, D) lane-dense block.
    acc = x_ref[:, 0:feat].astype(acc_dtype)
    for k in range(1, n_children):  # static unroll: aligned lane slices, VPU adds
        acc = acc + x_ref[:, k * feat:(k + 1) * feat].astype(acc_dtype)
    o_ref[...] = acc.astype(o_ref.dtype)


def _or_sum_3d_kernel(x_ref, o_ref, *, n_children, acc_dtype):
    # x_ref: (TB, N, TD) block; o_ref: (TB, TD) block.  General fallback path.
    acc = x_ref[:, 0, :].astype(acc_dtype)
    for k in range(1, n_children):
        acc = acc + x_ref[:, k, :].astype(acc_dtype)
    o_ref[...] = acc.astype(o_ref.dtype)


# ---------------------------------------------------------------------------
# Tile sizing
# ---------------------------------------------------------------------------
def _choose_batch_tile(B, row_bytes, target_bytes):
    """Batch tile ~target_bytes per input block, with >= ~4 grid steps when B > 8."""
    if B <= 8:
        return B  # tiny problem: single full-batch block (block dim == full dim)
    tb = max(1, target_bytes // max(1, row_bytes))
    # Never let the grid collapse to one/two steps: keep pipelining + megacore
    # sharding alive by capping the tile at ~ceil(B/4) (sublane-aligned).
    tb = min(tb, _round_up(pl.cdiv(B, 4), 8))
    tb = max(8, (tb // 8) * 8)  # keep output block sublane-aligned
    return min(tb, B)


# ---------------------------------------------------------------------------
# Wrapper
# ---------------------------------------------------------------------------
def iterative_or_node_forward(child_outputs: jax.Array,
                              *, target_tile_bytes: int = 4 * 1024 * 1024) -> jax.Array:
    """Pallas equivalent of IterativeORNode.forward.

    child_outputs: (batch, num_children, feature) -> (batch, 1, feature)
    """
    B, N, D = child_outputs.shape
    acc_dtype, out_dtype = _acc_and_out_dtype(child_outputs.dtype)

    if N == 0:  # sum over an empty axis
        return jnp.zeros((B, 1, D), dtype=out_dtype)

    itemsize = jnp.dtype(child_outputs.dtype).itemsize
    out_itemsize = jnp.dtype(out_dtype).itemsize
    cost = pl.CostEstimate(
        flops=(N - 1) * B * D,
        transcendentals=0,
        bytes_accessed=B * N * D * itemsize + B * D * out_itemsize,
    )

    flat_row_bytes = N * D * itemsize
    use_flat = (D % _LANE == 0) and (flat_row_bytes <= 2 * target_tile_bytes)

    if use_flat:
        # ---- fast path: children flattened into lanes --------------------
        TB = _choose_batch_tile(B, flat_row_bytes, target_tile_bytes)
        grid = (pl.cdiv(B, TB),)
        x = child_outputs.reshape(B, N * D)  # free, row-contiguous
        kernel = functools.partial(_or_sum_flat_kernel,
                                   n_children=N, feat=D, acc_dtype=acc_dtype)
        in_specs = [pl.BlockSpec((TB, N * D), lambda i: (i, 0))]
        out_specs = pl.BlockSpec((TB, D), lambda i: (i, 0))
        dim_sem = ("parallel",)
        in_tile_bytes = TB * N * D * itemsize
        out_tile_bytes = TB * D * out_itemsize
    else:
        # ---- general path: tile batch AND feature axes -------------------
        sublane = _SUBLANE_FOR_ITEMSIZE.get(itemsize, 8)
        n_pad = _round_up(N, sublane)
        td_budget = max(
            _LANE,
            (target_tile_bytes // max(1, 8 * n_pad * itemsize)) // _LANE * _LANE,
        )
        TD = min(D, td_budget)
        row_bytes = n_pad * _round_up(TD, _LANE) * itemsize
        TB = _choose_batch_tile(B, row_bytes, target_tile_bytes)
        grid = (pl.cdiv(B, TB), pl.cdiv(D, TD))
        x = child_outputs
        kernel = functools.partial(_or_sum_3d_kernel,
                                   n_children=N, acc_dtype=acc_dtype)
        in_specs = [pl.BlockSpec((TB, N, TD), lambda i, j: (i, 0, j))]
        out_specs = pl.BlockSpec((TB, TD), lambda i, j: (i, j))
        dim_sem = ("parallel", "parallel")
        in_tile_bytes = TB * n_pad * _round_up(TD, _LANE) * itemsize
        out_tile_bytes = TB * _round_up(TD, _LANE) * out_itemsize

    # Double-buffered footprint; raise the scoped-VMEM limit only when the
    # conservative v5e default (~16 MiB) would not cover it, and stay well
    # inside v7x's 64 MiB physical VMEM.
    vmem_need = 2 * (in_tile_bytes + out_tile_bytes)
    vmem_limit = None
    if vmem_need > 14 * 1024 * 1024:
        vmem_limit = int(min(vmem_need + (4 << 20), 56 << 20))

    out_2d = pl.pallas_call(
        kernel,
        out_shape=jax.ShapeDtypeStruct((B, D), out_dtype),
        grid=grid,
        in_specs=in_specs,
        out_specs=out_specs,
        compiler_params=pltpu.CompilerParams(
            dimension_semantics=dim_sem,
            vmem_limit_bytes=vmem_limit,
        ),
        cost_estimate=cost,
    )(x)

    # keepdim=True: free metadata reshape outside the kernel.
    return out_2d.reshape(B, 1, D)


if __name__ == "__main__":
    key = jax.random.PRNGKey(0)

    # Test 1: lane-dense fast path (flat layout), small shapes from the module.
    B, N, D = 8, 4, 128
    x1 = jax.random.normal(key, (B, N, D), dtype=jnp.float32)
    out1 = jax.block_until_ready(iterative_or_node_forward(x1))
    ref1 = jnp.sum(x1, axis=1, keepdims=True)
    assert out1.shape == (B, 1, D), out1.shape
    assert jnp.allclose(out1, ref1, atol=1e-5, rtol=1e-5)

    # Test 2: fast path with a multi-step batch grid (pipelining engaged).
    k2 = jax.random.fold_in(key, 1)
    B2, N2, D2 = 48, 4, 256
    x2 = jax.random.normal(k2, (B2, N2, D2), dtype=jnp.float32)
    out2 = jax.block_until_ready(iterative_or_node_forward(x2))
    ref2 = jnp.sum(x2, axis=1, keepdims=True)
    assert out2.shape == (B2, 1, D2), out2.shape
    assert jnp.allclose(out2, ref2, atol=1e-5, rtol=1e-5)

    # Test 3: general fallback path (feature dim not a multiple of 128).
    k3 = jax.random.fold_in(key, 2)
    B3, N3, D3 = 8, 3, 96
    x3 = jax.random.normal(k3, (B3, N3, D3), dtype=jnp.float32)
    out3 = jax.block_until_ready(iterative_or_node_forward(x3))
    ref3 = jnp.sum(x3, axis=1, keepdims=True)
    assert out3.shape == (B3, 1, D3), out3.shape
    assert jnp.allclose(out3, ref3, atol=1e-5, rtol=1e-5)

    print("KERNEL_OK")
</pallas_src>

<mosaic_0001>
module attributes {stable_mosaic.version = 11 : i64} {
  func.func @_or_sum_flat_kernel(%arg0: i32, %arg1: memref<8x512xf32, #tpu.memory_space<vmem>>, %arg2: memref<8x128xf32, #tpu.memory_space<vmem>>) attributes {dimension_semantics = [#tpu.dimension_semantics<parallel>], iteration_bounds = array<i64: 1>, scalar_prefetch = 0 : i64, scratch_operands = 0 : i64, tpu.core_type = #tpu.core_type<tc>, window_params = [{transform_indices = @transform_0, window_bounds = array<i64: 8, 512>}, {transform_indices = @transform_1, window_bounds = array<i64: 8, 128>}]} {
    %c0 = arith.constant 0 : index
    %c0_0 = arith.constant 0 : index
    %0 = vector.load %arg1[%c0, %c0_0] : memref<8x512xf32, #tpu.memory_space<vmem>>, vector<8x128xf32>
    %c0_1 = arith.constant 0 : index
    %c128 = arith.constant 128 : index
    %1 = vector.load %arg1[%c0_1, %c128] : memref<8x512xf32, #tpu.memory_space<vmem>>, vector<8x128xf32>
    %2 = arith.addf %0, %1 : vector<8x128xf32>
    %c0_2 = arith.constant 0 : index
    %c256 = arith.constant 256 : index
    %3 = vector.load %arg1[%c0_2, %c256] : memref<8x512xf32, #tpu.memory_space<vmem>>, vector<8x128xf32>
    %4 = arith.addf %2, %3 : vector<8x128xf32>
    %c0_3 = arith.constant 0 : index
    %c384 = arith.constant 384 : index
    %5 = vector.load %arg1[%c0_3, %c384] : memref<8x512xf32, #tpu.memory_space<vmem>>, vector<8x128xf32>
    %6 = arith.addf %4, %5 : vector<8x128xf32>
    %c0_4 = arith.constant 0 : index
    %c0_5 = arith.constant 0 : index
    %7 = vector.load %arg2[%c0_4, %c0_5] : memref<8x128xf32, #tpu.memory_space<vmem>>, vector<8x128xf32>
    tpu.vector_store %arg2[%c0_4, %c0_5], %6 {strides = array<i32>} : memref<8x128xf32, #tpu.memory_space<vmem>>, vector<8x128xf32>,
    return
  }
  func.func @transform_0(%arg0: i32) -> (i32, i32) {
    %c0_i32 = arith.constant 0 : i32
    %c0_i32_0 = arith.constant 0 : i32
    return %arg0, %c0_i32 : i32, i32
  }
  func.func @transform_1(%arg0: i32) -> (i32, i32) {
    %c0_i32 = arith.constant 0 : i32
    %c0_i32_0 = arith.constant 0 : i32
    return %arg0, %c0_i32 : i32, i32
  }
}

</mosaic_0001>

<bundles_post_ra>
// kernel: tpu_custom_call.1
= control target key start
LH: loop header
LB: loop body
LE: loop exit
PB: predicated region body
PF: predicated region fallthrough
CT: control target
= control target key end

     0   :  { %6 = vsyncpa [#allocation3], 0  ;;  %s108_s0 = inlined_call_operand.hbm [shape: f32[8,512], index: 0, kind: input, shape index: {}]   ;;  %s109_s1 = inlined_call_operand.hbm [shape: f32[8,128], index: 1, kind: output, shape index: {}]  }
   0x1   :  { %7 = vsyncpa [#allocation4], 0  ;;  %s90_s6 = smov [#allocation2]  }
   0x2   :  { %s14_s7 = sshll.u32 %s90_s6, 4  ;;  %s15_s7 = int_to_ptr.vmem [resolvable:$true] %s14_s7 }
   0x3   :  { %s54_s8 = scalar_lea.vmem %s15_s7, 512  ;;  %p59_p1 = scmp.lt.s32.totalorder %s15_s7, %s15_s7 }
   0x4   :  { %p55_p0 = scmp.ne.s32.totalorder %s15_s7, %s54_s8  ;;  %p60_p2 = scmp.lt.s32.totalorder %s54_s8, %s54_s8 }
   0x6   :  { %p61_p3 = por %p60_p2, %p59_p1 }
   0x8   :  { %p62_p4 = pnand %p61_p3, %p55_p0 }
   0xa   :  { %65 = shalt.err (!%p62_p4)
}
   0xb   :  { %17 = dma.hbm_to_vmem [thread:$0]  %s108_s0, 512, %s15_s7, [#allocation3]  }
   0xc   :  { %86 = dma.done.wait [#allocation3], 512  }
   0xd   :  { %87 = vsyncadd [#allocation3], 4294966784  ;;  %v21_v0 = vld [vmem:[#allocation2] sm:$0xff]  ;;  %v22_v1 = vld [vmem:[#allocation2 + $0x8] sm:$0xff]  ;;  %s91_s11 = smov [#allocation5]  }
   0xe   :  { %v24_v2 = vld [vmem:[#allocation2 + $0x10] sm:$0xff]  ;;  %v23_v3 = vadd.f32 %v22_v1, %v21_v0  ;;  %v26_v4 = vld [vmem:[#allocation2 + $0x18] sm:$0xff]  ;;  %s35_s12 = sshll.u32 %s91_s11, 4  ;;  %s36_s12 = int_to_ptr.vmem [resolvable:$true] %s35_s12 }
   0xf   :  { %s66_s13 = scalar_lea.vmem %s36_s12, 128  ;;  %p71_p6 = scmp.lt.s32.totalorder %s36_s12, %s36_s12 }
  0x10   :  { %v25_v5 = vadd.f32 %v24_v2, %v23_v3  ;;  %p67_p5 = scmp.ne.s32.totalorder %s36_s12, %s66_s13  ;;  %p72_p7 = scmp.lt.s32.totalorder %s66_s13, %s66_s13 }
  0x12   :  { %v27_v6 = vadd.f32 %v26_v4, %v25_v5  ;;  %p73_p8 = por %p72_p7, %p71_p6 }
  0x14   :  { %28 = vst [vmem:[#allocation5] sm:$0xff] %v27_v6  ;;  %p74_p9 = pnand %p73_p8, %p67_p5 }
  0x16   :  { %77 = shalt.err (!%p74_p9)
}
  0x17   :  { %38 = dma.vmem_to_hbm [thread:$0]  %s36_s12, 128, %s109_s1, [#allocation4]  }
  0x18   :  { %88 = dma.done.wait [#allocation4], 128  }
  0x19   :  { %89 = vsyncadd [#allocation4], 4294967168 }
  0x1a   :  { %42 = vsyncpa [#allocation3], 1 }
  0x1b   :  { %43 = vsyncpa [#allocation4], 1 }

</bundles_post_ra>
